<compile_context>
chip_gen: v7x
topology: tpu7x:2x2x1
jax: 0.10.0
libtpu: 0.0.40
codegen_flags: <defaults>
</compile_context>

<pallas_src>
import functools

import jax
import jax.numpy as jnp
from jax.experimental import pallas as pl
from jax.experimental.pallas import tpu as pltpu

BN_EPS = 1e-5


# ---------------------------------------------------------------------------
# Sizing helpers
# ---------------------------------------------------------------------------
def _ceil_to(v, m):
    return ((v + m - 1) // m) * m


def _vmem_budget_bytes():
    """Generation-aware scoped-VMEM budget (~3/4 of physical per-core VMEM)."""
    phys = 64 * 1024 * 1024  # conservative fallback (v7x: 64 MiB / TensorCore)
    try:
        info = pltpu.get_tpu_info()
        cap = int(getattr(info, "vmem_capacity_bytes", 0) or 0)
        if cap > 0:
            phys = cap
    except Exception:
        pass
    return int(min((phys * 3) // 4, 112 * 1024 * 1024))


def _pick_pool_tile_n(n, c, hw, budget):
    """Batch tile for the pooling stream: largest power-of-two in [8,128] whose
    double-buffered, lane/sublane-padded x block fits the budget."""
    x_row = _ceil_to(c, 8) * _ceil_to(hw, 128) * 4        # f32, padded
    out_row = _ceil_to(c, 128) * 4
    avail = max(budget - (2 << 20), 1 << 20)
    tn = avail // (2 * (x_row + out_row))                  # x2: double-buffered
    tn = min(128, max(8, int(tn)))
    tn = 1 << (tn.bit_length() - 1)                        # power of two
    return max(1, min(tn, n))                              # never exceed batch


def _pick_fc_tile_n(n, c, hid, budget):
    """Matmul M tile for the fc stages; target 256 (MXU-shaped), shrink only if
    the fc0 residency (pooled + double-buffered w0 + h) would not fit VMEM."""
    def fc0_bytes(tn):
        pooled = 2 * _ceil_to(tn, 8) * _ceil_to(c, 128) * 4
        w0 = 2 * _ceil_to(c, 16) * _ceil_to(hid, 128) * 2   # bf16, double-buffered
        h = 2 * _ceil_to(tn, 16) * _ceil_to(hid, 128) * 2
        return pooled + w0 + h + (2 << 20)
    tn = 256
    while tn > 16 and fc0_bytes(tn) > budget:
        tn //= 2
    # TODO(synk): for very large in_channels the resident w0 itself may exceed
    # VMEM; that would need a K-chunked grid axis (not needed for SimCLR sizes).
    return min(tn, max(16, _ceil_to(n, 16)))


# ---------------------------------------------------------------------------
# Kernels
# ---------------------------------------------------------------------------
def _pool_kernel(x_ref, pooled_ref, *, inv_hw):
    # AdaptiveAvgPool2d((1,1)) + flatten == mean over the flattened spatial axis.
    # NOTE: this reduces the last (lane) axis via the XLU; the stage is HBM-bound
    # so it is normally hidden.  TODO(synk): for small HW (e.g. 49) a
    # channels-last (N, HW, C) layout would turn this into sublane VPU adds.
    pooled_ref[...] = jnp.sum(x_ref[...], axis=-1) * inv_hw


def _fc0_kernel(p_ref, w0_ref, h_ref, s_ref, ss_ref,
                *, tile_n, n_valid, needs_mask):
    pooled = p_ref[...]                                           # (tile_n, C) f32
    h = jnp.dot(pooled.astype(jnp.bfloat16), w0_ref[...],
                preferred_element_type=jnp.float32)               # (tile_n, hid) f32
    h_bf = h.astype(jnp.bfloat16)
    h_ref[...] = h_bf
    # bn0 statistics of exactly the values bn0 will later normalize (bf16-rounded).
    hr = h_bf.astype(jnp.float32)
    if needs_mask:
        row = (pl.program_id(0) * tile_n
               + jax.lax.broadcasted_iota(jnp.int32, hr.shape, 0))
        hr = jnp.where(row < n_valid, hr, 0.0)   # drop batch-padding/garbage rows
    s_ref[...] = jnp.sum(hr, axis=0, keepdims=True)[None]         # (1,1,hid)
    ss_ref[...] = jnp.sum(hr * hr, axis=0, keepdims=True)[None]


def _bn0_relu_fc1_kernel(h_ref, sc0_ref, sh0_ref, w1_ref, z_ref, s_ref, ss_ref,
                         *, tile_n, n_valid, needs_mask):
    h = h_ref[...].astype(jnp.float32)                            # (tile_n, hid)
    # bn0 folded into a single FMA, then ReLU.
    a = jnp.maximum(h * sc0_ref[...] + sh0_ref[...], 0.0)
    if needs_mask:
        # Padding rows become relu(shift0) != 0 after the fold; zero them so
        # they contribute exactly nothing to the bn1 statistics (load-bearing).
        row = (pl.program_id(0) * tile_n
               + jax.lax.broadcasted_iota(jnp.int32, a.shape, 0))
        a = jnp.where(row < n_valid, a, 0.0)
    z = jnp.dot(a.astype(jnp.bfloat16), w1_ref[...],
                preferred_element_type=jnp.float32)               # (tile_n, out_c)
    z_ref[...] = z
    s_ref[...] = jnp.sum(z, axis=0, keepdims=True)[None]          # (1,1,out_c)
    ss_ref[...] = jnp.sum(z * z, axis=0, keepdims=True)[None]


# ---------------------------------------------------------------------------
# Host-side glue
# ---------------------------------------------------------------------------
def _fold_bn(sums, sumsqs, gamma, beta, n):
    """Reduce per-tile (sum, sumsq) partials and fold into scale/shift vectors."""
    total = jnp.sum(sums, axis=(0, 1))
    total_sq = jnp.sum(sumsqs, axis=(0, 1))
    mean = total / n
    # One-pass variance; max(.,0) guards cancellation.  Adequate for BN use.
    var = jnp.maximum(total_sq / n - mean * mean, 0.0)
    scale = gamma.reshape(-1) * jax.lax.rsqrt(var + BN_EPS)
    shift = beta.reshape(-1) - mean * scale
    return scale.reshape(1, -1), shift.reshape(1, -1)


def simclr_neck_forward(x_nchw, params, tile_n=None):
    """x_nchw: (N, C, H, W) float32.  params: dict from init_params.  Returns [out]."""
    N, C, H, W = x_nchw.shape
    HW = H * W
    hid = params["w0"].shape[1]
    out_c = params["w1"].shape[1]

    budget = _vmem_budget_bytes()
    tn_p = _pick_pool_tile_n(N, C, HW, budget)
    tn_fc = int(tile_n) if tile_n is not None else _pick_fc_tile_n(N, C, hid, budget)
    n_tiles_fc = pl.cdiv(N, tn_fc)
    Np = n_tiles_fc * tn_fc
    needs_mask = (Np != N)

    cparams = pltpu.CompilerParams(
        dimension_semantics=("parallel",),
        vmem_limit_bytes=budget,
    )

    # bf16 weights: halves resident VMEM / HBM traffic, doubles MXU throughput.
    # (Grid-invariant blocks; a second pipeline buffer for them is wasted VMEM
    # but the staged design leaves ample headroom even on v7x.)
    w0 = params["w0"].astype(jnp.bfloat16)
    w1 = params["w1"].astype(jnp.bfloat16)

    # ---- stage 1: adaptive average pool (HBM-roofline streaming) -----------
    x3 = x_nchw.reshape(N, C, HW)          # free reshape of contiguous NCHW
    g_p = pl.cdiv(N, tn_p)
    pooled = pl.pallas_call(
        functools.partial(_pool_kernel, inv_hw=1.0 / HW),
        out_shape=jax.ShapeDtypeStruct((g_p * tn_p, C), jnp.float32),
        grid_spec=pltpu.PrefetchScalarGridSpec(
            num_scalar_prefetch=0,
            grid=(g_p,),
            in_specs=[pl.BlockSpec((tn_p, C, HW), lambda i: (i, 0, 0))],
            out_specs=pl.BlockSpec((tn_p, C), lambda i: (i, 0)),
        ),
        compiler_params=cparams,
        cost_estimate=pl.CostEstimate(
            flops=N * C * HW, transcendentals=0,
            bytes_accessed=N * C * HW * 4 + N * C * 4),
    )(x3)

    # Reconcile the pooling tiling with the fc tiling (pooled is only ~N x C,
    # so this pad/slice is negligible; it is a no-op when N % tn_fc == 0).
    m_pool = g_p * tn_p
    if m_pool > Np:
        pooled = pooled[:Np]
    elif m_pool < Np:
        pooled = jnp.pad(pooled, ((0, Np - m_pool), (0, 0)))

    # ---- stage 2: fc0 + bn0 batch-stat partials -----------------------------
    kernel_fc0 = functools.partial(
        _fc0_kernel, tile_n=tn_fc, n_valid=N, needs_mask=needs_mask)
    h_bf16, s0, ss0 = pl.pallas_call(
        kernel_fc0,
        out_shape=(
            jax.ShapeDtypeStruct((Np, hid), jnp.bfloat16),
            jax.ShapeDtypeStruct((n_tiles_fc, 1, hid), jnp.float32),
            jax.ShapeDtypeStruct((n_tiles_fc, 1, hid), jnp.float32),
        ),
        grid_spec=pltpu.PrefetchScalarGridSpec(
            num_scalar_prefetch=0,
            grid=(n_tiles_fc,),
            in_specs=[
                pl.BlockSpec((tn_fc, C), lambda i: (i, 0)),
                pl.BlockSpec((C, hid), lambda i: (0, 0)),      # resident weights
            ],
            out_specs=[
                pl.BlockSpec((tn_fc, hid), lambda i: (i, 0)),
                pl.BlockSpec((1, 1, hid), lambda i: (i, 0, 0)),
                pl.BlockSpec((1, 1, hid), lambda i: (i, 0, 0)),
            ],
        ),
        compiler_params=cparams,
        cost_estimate=pl.CostEstimate(
            flops=2 * Np * C * hid, transcendentals=0,
            bytes_accessed=(Np * C * 4 + C * hid * 2 + Np * hid * 2
                            + 2 * n_tiles_fc * hid * 4)),
    )(pooled, w0)

    scale0, shift0 = _fold_bn(s0, ss0, params["g0"], params["b0"], N)

    # ---- stage 3: folded bn0 + relu + fc1 + bn1 batch-stat partials ---------
    kernel_fc1 = functools.partial(
        _bn0_relu_fc1_kernel, tile_n=tn_fc, n_valid=N, needs_mask=needs_mask)
    z, s1, ss1 = pl.pallas_call(
        kernel_fc1,
        out_shape=(
            jax.ShapeDtypeStruct((Np, out_c), jnp.float32),
            jax.ShapeDtypeStruct((n_tiles_fc, 1, out_c), jnp.float32),
            jax.ShapeDtypeStruct((n_tiles_fc, 1, out_c), jnp.float32),
        ),
        grid_spec=pltpu.PrefetchScalarGridSpec(
            num_scalar_prefetch=0,
            grid=(n_tiles_fc,),
            in_specs=[
                pl.BlockSpec((tn_fc, hid), lambda i: (i, 0)),
                pl.BlockSpec((1, hid), lambda i: (0, 0)),
                pl.BlockSpec((1, hid), lambda i: (0, 0)),
                pl.BlockSpec((hid, out_c), lambda i: (0, 0)),  # resident weights
            ],
            out_specs=[
                pl.BlockSpec((tn_fc, out_c), lambda i: (i, 0)),
                pl.BlockSpec((1, 1, out_c), lambda i: (i, 0, 0)),
                pl.BlockSpec((1, 1, out_c), lambda i: (i, 0, 0)),
            ],
        ),
        compiler_params=cparams,
        cost_estimate=pl.CostEstimate(
            flops=2 * Np * hid * out_c + 4 * Np * hid, transcendentals=0,
            bytes_accessed=(Np * hid * 2 + hid * out_c * 2 + Np * out_c * 4
                            + 2 * n_tiles_fc * out_c * 4)),
    )(h_bf16, scale0, shift0, w1)

    scale1, shift1 = _fold_bn(s1, ss1, params["g1"], params["b1"], N)

    # ---- epilogue: bn1 is a trivial memory-bound FMA -> leave it to XLA ----
    out = z[:N] * scale1 + shift1
    return [out]


def init_params(key, in_channels, hid_channels, out_channels, std=0.01):
    # Matches _init_weights(init_linear='normal', std=0.01, bias=0.0):
    #   Linear weights ~ N(0, std), no bias (with_bias=False);
    #   BatchNorm weight=1, bias=0.
    k0, k1 = jax.random.split(key)
    # stored as (in, out) == PyTorch weight.T
    w0 = jax.random.normal(k0, (in_channels, hid_channels), jnp.float32) * std
    w1 = jax.random.normal(k1, (hid_channels, out_channels), jnp.float32) * std
    return {
        "w0": w0,
        "g0": jnp.ones((1, hid_channels), jnp.float32),
        "b0": jnp.zeros((1, hid_channels), jnp.float32),
        "w1": w1,
        "g1": jnp.ones((1, out_channels), jnp.float32),
        "b1": jnp.zeros((1, out_channels), jnp.float32),
    }


def _reference_forward(x_nchw, params):
    # Pure-JAX reference using the same bf16-quantized weights as the kernel.
    N, C, H, W = x_nchw.shape
    pooled = jnp.mean(x_nchw.reshape(N, C, H * W), axis=-1)
    w0 = params["w0"].astype(jnp.bfloat16).astype(jnp.float32)
    w1 = params["w1"].astype(jnp.bfloat16).astype(jnp.float32)

    def bn(h, g, b):
        mean = jnp.mean(h, axis=0, keepdims=True)
        var = jnp.mean((h - mean) ** 2, axis=0, keepdims=True)
        return (h - mean) * jax.lax.rsqrt(var + BN_EPS) * g + b

    h = bn(pooled @ w0, params["g0"], params["b0"])
    z = bn(jnp.maximum(h, 0.0) @ w1, params["g1"], params["b1"])
    return z


if __name__ == "__main__":
    # Small shapes consistent with the module.
    N, C, H, W = 2, 4, 16, 16
    hid_channels, out_channels = 32, 16

    key = jax.random.PRNGKey(0)
    kx, kp = jax.random.split(key)
    x = jax.random.normal(kx, (N, C, H, W), jnp.float32)
    params = init_params(kp, C, hid_channels, out_channels)

    out = simclr_neck_forward(x, params)[0]
    jax.block_until_ready(out)
    assert out.shape == (N, out_channels)

    ref = _reference_forward(x, params)
    # bf16 activation casts inside the kernel -> loose tolerance vs f32 ref.
    assert bool(jnp.allclose(out, ref, rtol=0.1, atol=0.1)), \
        float(jnp.max(jnp.abs(out - ref)))
    print("KERNEL_OK")
</pallas_src>

<mosaic_0001>
module attributes {stable_mosaic.version = 11 : i64} {
  func.func @_pool_kernel(%arg0: i32, %arg1: memref<2x4x256xf32, #tpu.memory_space<vmem>>, %arg2: memref<2x4xf32, #tpu.memory_space<vmem>>) attributes {dimension_semantics = [#tpu.dimension_semantics<parallel>], iteration_bounds = array<i64: 1>, scalar_prefetch = 0 : i64, scratch_operands = 0 : i64, tpu.core_type = #tpu.core_type<tc>, window_params = [{transform_indices = @transform_0, window_bounds = array<i64: 2, 4, 256>}, {transform_indices = @transform_1, window_bounds = array<i64: 2, 4>}]} {
    %c0 = arith.constant 0 : index
    %c0_0 = arith.constant 0 : index
    %c0_1 = arith.constant 0 : index
    %0 = vector.load %arg1[%c0, %c0_0, %c0_1] : memref<2x4x256xf32, #tpu.memory_space<vmem>>, vector<2x4x256xf32>
    %cst = arith.constant dense<0.000000e+00> : vector<2x4xf32>
    %1 = vector.multi_reduction <add>, %0, %cst [2] : vector<2x4x256xf32> to vector<2x4xf32>
    %cst_2 = arith.constant 3.906250e-03 : f32
    %2 = vector.broadcast %cst_2 : f32 to vector<2x4xf32>
    %3 = arith.mulf %1, %2 : vector<2x4xf32>
    %c0_3 = arith.constant 0 : index
    %c0_4 = arith.constant 0 : index
    %4 = vector.load %arg2[%c0_3, %c0_4] : memref<2x4xf32, #tpu.memory_space<vmem>>, vector<2x4xf32>
    tpu.vector_store %arg2[%c0_3, %c0_4], %3 {strides = array<i32>} : memref<2x4xf32, #tpu.memory_space<vmem>>, vector<2x4xf32>,
    return
  }
  func.func @transform_0(%arg0: i32) -> (i32, i32, i32) {
    %c0_i32 = arith.constant 0 : i32
    %c0_i32_0 = arith.constant 0 : i32
    %c0_i32_1 = arith.constant 0 : i32
    return %arg0, %c0_i32, %c0_i32_0 : i32, i32, i32
  }
  func.func @transform_1(%arg0: i32) -> (i32, i32) {
    %c0_i32 = arith.constant 0 : i32
    %c0_i32_0 = arith.constant 0 : i32
    return %arg0, %c0_i32 : i32, i32
  }
}

</mosaic_0001>

<bundles_post_ra>
// kernel: tpu_custom_call.1
= control target key start
LH: loop header
LB: loop body
LE: loop exit
PB: predicated region body
PF: predicated region fallthrough
CT: control target
= control target key end

     0   :  { %6 = vsyncpa [#allocation3], 0  ;;  %s168_s0 = inlined_call_operand.hbm [shape: f32[2,4,256], index: 0, kind: input, shape index: {}]   ;;  %s169_s1 = inlined_call_operand.hbm [shape: f32[2,4], index: 1, kind: output, shape index: {}]  }
   0x1   :  { %7 = vsyncpa [#allocation4], 0  ;;  %s130_s6 = smov [#allocation2]   ;;  %s82_s10 = scalar_lea.hbm %s168_s0, 256 }
   0x2   :  { %s13_s7 = sshll.u32 %s130_s6, 4  ;;  %p83_p0 = scmp.ne.s32.totalorder %s168_s0, %s82_s10  ;;  %s14_s7 = int_to_ptr.vmem [resolvable:$true] %s13_s7 }
   0x3   :  { %p86_p1 = scmp.lt.u32.totalorder %s82_s10, %s168_s0 }
   0x5   :  { %p88_p2 = pnand %p86_p1, %p83_p0 }
   0x7   :  { %91 = shalt.err (!%p88_p2)
}
   0x8   :  { %s92_s15 = scalar_lea.vmem %s14_s7, 256  ;;  %p97_p4 = scmp.lt.s32.totalorder %s14_s7, %s14_s7 }
   0x9   :  { %p93_p3 = scmp.ne.s32.totalorder %s14_s7, %s92_s15  ;;  %p98_p5 = scmp.lt.s32.totalorder %s92_s15, %s92_s15 }
   0xb   :  { %p99_p6 = por %p98_p5, %p97_p4 }
   0xd   :  { %p100_p7 = pnand %p99_p6, %p93_p3 }
   0xf   :  { %103 = shalt.err (!%p100_p7)
}
  0x10   :  { %s131_s16 = smov 128   ;;  %s132_s17 = smov 8  }
  0x11   :  { %19 = dma.hbm_to_vmem [thread:$0]  %s168_s0, 256, %s14_s7, [#allocation3], %s131_s16, %s131_s16, %s132_s17  }
  0x12   :  { %126 = dma.done.wait [#allocation3], 256  }
  0x13   :  { %127 = vsyncadd [#allocation3], 4294967040  ;;  %vm31_vm0 = vcmask 1043456   ;;  %v23_v0 = vld [vmem:[#allocation2] sm:$0xff]  ;;  %v24_v1 = vld [vmem:[#allocation2 + $0x8] sm:$0xff]  ;;  %v46_v10 = vlaneseq  ;;  %s133_s0 = smov [#allocation5]  }
  0x14   :  { %v27_v2 = vcombine.high %v23_v0, %v23_v0  ;;  %v32_v3 = vsel %vm31_vm0, %v23_v0, 0.0  ;;  %v28_v4 = vcombine.high %v24_v1, %v24_v1  ;;  %v37_v6 = vsel %vm31_vm0, %v24_v1, 0.0  ;;  %s67_s20 = sshll.u32 %s133_s0, 4  ;;  %s68_s20 = int_to_ptr.vmem [resolvable:$true] %s67_s20 }
  0x15   :  { %v47_v11 = vand.u32 127, %v46_v10  ;;  %v49_v12 = vshrl.u32 %v46_v10, 7  ;;  %vm56_vm1 = vcmask 1041409   ;;  %vm59_vm2 = vcmask 25600   ;;  %s104_s21 = scalar_lea.vmem %s68_s20, 32  ;;  %p109_p9 = scmp.lt.s32.totalorder %s68_s20, %s68_s20 }
  0x16   :  { %v33_v5 = vsel %vm31_vm0, %v27_v2, 0.0  ;;  %v38_v7 = vsel %vm31_vm0, %v28_v4, 0.0  ;;  %p105_p8 = scmp.ne.s32.totalorder %s68_s20, %s104_s21  ;;  %p110_p10 = scmp.lt.s32.totalorder %s104_s21, %s104_s21 }
  0x17   :  { %v34_v8 = vadd.f32 %v33_v5, %v32_v3  ;;  %v39_v9 = vadd.f32 %v38_v7, %v37_v6  ;;  %v50_v14 = vsub.s32 %v47_v11, %v49_v12 }
  0x18   :  { %p111_p11 = por %p110_p10, %p109_p9 }
  0x19   :  { %35 = vadd.xlane.f32.xlu0 %v34_v8 }
  0x1a   :  { %p112_p12 = pnand %p111_p11, %p105_p8 }
  0x1d   :  { %40 = vadd.xlane.f32.xlu0 %v39_v9 }
  0xa6   :  { %v36_v13 = vpop.xlane.xlu0 %35 }
  0xa7   :  { %v42_v15 = vmul.f32 0.00390625, %v36_v13 }
  0xa9   :  { %v51_v18 = vrot.slane %v42_v15, %v50_v14 }
  0xaa   :  { %v41_v16 = vpop.xlane.xlu0 %40 }
  0xab   :  { %v43_v17 = vmul.f32 0.00390625, %v41_v16 }
  0xad   :  { %v55_v19 = vrot.slane %v43_v17, %v50_v14 }
  0xaf   :  { %v57_v20 = vsel %vm56_vm1, %v55_v19, %v51_v18 }
  0xb0   :  { %60 = vst.msk [vmem:[#allocation5] sm:$0x3] %vm59_vm2, %v57_v20 }
  0xb1   :  { %115 = shalt.err (!%p112_p12)
}
  0xb2   :  { %s116_s24 = scalar_lea.hbm %s169_s1, 32 }
  0xb3   :  { %p117_p13 = scmp.ne.s32.totalorder %s169_s1, %s116_s24  ;;  %p120_p0 = scmp.lt.u32.totalorder %s116_s24, %s169_s1 }
  0xb5   :  { %p122_p1 = pnand %p120_p0, %p117_p13 }
  0xb7   :  { %125 = shalt.err (!%p122_p1)
}
  0xb8   :  { %70 = dma.vmem_to_hbm [thread:$0]  %s68_s20, 32, %s169_s1, [#allocation4]  }
  0xb9   :  { %128 = dma.done.wait [#allocation4], 32  }
  0xba   :  { %129 = vsyncadd [#allocation4], 4294967264 }
  0xbb   :  { %74 = vsyncpa [#allocation3], 1 }
  0xbc   :  { %75 = vsyncpa [#allocation4], 1 }

</bundles_post_ra>
